<compile_context>
chip_gen: v7x
topology: tpu7x:2x2x1
jax: 0.10.0
libtpu: 0.0.40
codegen_flags: <defaults>
</compile_context>

<pallas_src>
import functools

import jax
import jax.numpy as jnp
from jax.experimental import pallas as pl
from jax.experimental.pallas import tpu as pltpu

_LANE = 128


def _round_up(x, m):
    return (x + m - 1) // m * m


def _sublane(dtype):
    # sublane packing: 8 rows for 4-byte dtypes, 16 for 2-byte, 32 for 1-byte
    return max(8, 32 // jnp.dtype(dtype).itemsize)


def _vmem_capacity_bytes():
    try:
        return int(pltpu.get_tpu_info().vmem_capacity_bytes)
    except Exception:
        return 64 * 1024 * 1024  # conservative: v7x per-TensorCore VMEM


def _choose_block(n, c, hw, logits_dtype, label_dtype):
    """Pick (bn, tile, vmem_limit_bytes) from the real padded VMEM footprint."""
    phys = _vmem_capacity_bytes()
    # ~40 MiB working-set cap on v7x (64 MiB VMEM), 80 MiB on v5e/v6e (128 MiB)
    budget = min(phys * 5 // 8, 80 << 20)

    # Bytes per lane of `tile` per bn row: both inputs, sublane-padded C axis,
    # double-buffered by the pipeline (2x), each with its own itemsize.
    per_lane_in = 0
    for dt in (logits_dtype, label_dtype):
        isz = jnp.dtype(dt).itemsize
        per_lane_in += 2 * _round_up(c, _sublane(dt)) * isz
    # Resident (1, 1, tile) f32 output block (sublane pad 1->8, 2 buffers).
    per_lane_out = 2 * 8 * 4

    hw_up = _round_up(hw, _LANE)
    tile = (budget // (per_lane_in + per_lane_out)) // _LANE * _LANE
    tile = max(_LANE, min(tile, hw_up))

    # Fold batch rows into the block when the whole image fits in one tile so
    # each grid step still moves a sizable slab.
    bn = 1
    if tile == hw_up and n > 1:
        bn_budget = max(1, (budget - per_lane_out * tile) // (per_lane_in * tile))
        # keep >= 2 batch blocks so the "parallel" axis can use both v7x cores
        bn_cap = max(1, min(n, int(bn_budget), n // 2))
        for d in range(bn_cap, 0, -1):
            if n % d == 0:
                bn = d
                break

    footprint = bn * tile * per_lane_in + tile * per_lane_out
    vmem_limit = int(min(phys * 9 // 10, max(32 << 20, footprint + (16 << 20))))
    return bn, tile, vmem_limit


def _make_ce_kernel(rem, one_hot_labels):
    """Kernel over a (bn, C, tile) slab; accumulates per-lane loss partials.

    rem = hw % tile. If 0, every hw block is full and no mask code is emitted;
    otherwise only the last hw block applies the lane mask (pl.when-gated).
    """

    def kernel(logits_ref, label_ref, out_ref):
        j = pl.program_id(1)

        @pl.when(j == 0)
        def _init():
            out_ref[...] = jnp.zeros_like(out_ref)

        x = logits_ref[...].astype(jnp.float32)   # (bn, C, t)
        y = label_ref[...]                        # (bn, C, t), native dtype
        c = x.shape[1]

        # log-sum-exp over the channel (sublane) axis.
        m = jnp.max(x, axis=1, keepdims=True)                                # (bn,1,t)
        lse = m + jnp.log(jnp.sum(jnp.exp(x - m), axis=1, keepdims=True))    # (bn,1,t)

        if one_hot_labels:
            # Fast path: labels are exact one-hot -> target logit is a dot.
            tgt = jnp.sum(y.astype(jnp.float32) * x, axis=1, keepdims=True)
        else:
            # argmax over channels of the label (first-max tie break, like
            # torch.argmax), then gather the corresponding logit — all
            # elementwise / sublane-reduce work, no cross-lane traffic.
            cls = jax.lax.broadcasted_iota(jnp.int32, x.shape, 1)            # (bn,C,t)
            ymax = jnp.max(y, axis=1, keepdims=True)                         # (bn,1,t)
            idx = jnp.min(jnp.where(y == ymax, cls, c), axis=1, keepdims=True)
            tgt = jnp.sum(jnp.where(cls == idx, x, 0.0), axis=1, keepdims=True)

        loss = lse - tgt                                                     # (bn,1,t)

        def accum(l):
            out_ref[...] += jnp.sum(l, axis=0, keepdims=True)                # (1,1,t)

        if rem:
            last = pl.num_programs(1) - 1

            @pl.when(j != last)
            def _full():
                accum(loss)

            @pl.when(j == last)
            def _masked():
                col = jax.lax.broadcasted_iota(jnp.int32, loss.shape, 2)
                accum(jnp.where(col < rem, loss, 0.0))
        else:
            accum(loss)

    return kernel


@functools.partial(jax.jit, static_argnames=("reduction", "one_hot_labels"))
def cross_entropy_with_logits(logits, label, reduction="mean",
                              one_hot_labels=False):
    """Pallas implementation of CrossEntropyWithLogits.forward.

    logits, label: (N, C, H, W).  Returns a scalar in logits.dtype.
    """
    if reduction not in ("mean", "sum"):
        # TODO(synk): reduction='none' (per-pixel NHWC loss map) not
        # implemented; the reference module always constructs itself with 'mean'.
        raise ValueError(f"unsupported reduction: {reduction}")

    n, c, h, w = logits.shape
    hw = h * w
    x = logits.reshape(n, c, hw)    # contiguous, free reshape (no transpose)
    yl = label.reshape(n, c, hw)

    bn, tile, vmem_limit = _choose_block(n, c, hw, x.dtype, yl.dtype)
    grid_n = n // bn
    g = pl.cdiv(hw, tile)
    rem = hw % tile

    partials = pl.pallas_call(
        _make_ce_kernel(rem, one_hot_labels),
        out_shape=jax.ShapeDtypeStruct((grid_n, 1, tile), jnp.float32),
        grid_spec=pltpu.PrefetchScalarGridSpec(
            num_scalar_prefetch=0,
            grid=(grid_n, g),
            in_specs=[
                pl.BlockSpec((bn, c, tile), lambda i, j: (i, 0, j)),
                pl.BlockSpec((bn, c, tile), lambda i, j: (i, 0, j)),
            ],
            out_specs=pl.BlockSpec((1, 1, tile), lambda i, j: (i, 0, 0)),
        ),
        compiler_params=pltpu.CompilerParams(
            dimension_semantics=("parallel", "arbitrary"),
            vmem_limit_bytes=vmem_limit),
    )(x, yl)

    s = jnp.sum(partials)
    if reduction == "mean":
        s = s / (n * hw)
    return s.astype(logits.dtype)


def _reference_loss(logits, label, reduction="mean"):
    """Pure-JAX replica of the PyTorch module (permute+reshape+F.cross_entropy)."""
    n, c, h, w = logits.shape
    lt = jnp.transpose(logits, (0, 2, 3, 1)).reshape(-1, c).astype(jnp.float32)
    lb = jnp.transpose(label, (0, 2, 3, 1)).reshape(-1, c)
    tgt = jnp.argmax(lb, axis=1)
    logp = jax.nn.log_softmax(lt, axis=-1)
    picked = jnp.take_along_axis(logp, tgt[:, None], axis=1)[:, 0]
    loss = -picked
    loss = jnp.mean(loss) if reduction == "mean" else jnp.sum(loss)
    return loss.astype(logits.dtype)


if __name__ == "__main__":
    key = jax.random.PRNGKey(0)
    k1, k2, k3, k4, k5, k6 = jax.random.split(key, 6)

    # Case 1: segmentation-style one-hot labels, NCHW, batch=2, channels=4, 16x16.
    N, C, H, W = 2, 4, 16, 16
    logits = jax.random.normal(k1, (N, C, H, W), dtype=jnp.float32)
    cls = jax.random.randint(k2, (N, H, W), 0, C)
    label = jnp.transpose(jax.nn.one_hot(cls, C, dtype=jnp.float32), (0, 3, 1, 2))

    loss = jax.block_until_ready(cross_entropy_with_logits(logits, label))
    ref = _reference_loss(logits, label)
    assert loss.shape == ()
    assert jnp.allclose(loss, ref, rtol=1e-5, atol=1e-6), (loss, ref)

    # Same inputs through the static one-hot fast path.
    loss_oh = jax.block_until_ready(
        cross_entropy_with_logits(logits, label, one_hot_labels=True))
    assert jnp.allclose(loss_oh, ref, rtol=1e-5, atol=1e-6), (loss_oh, ref)

    # Case 2: non-128-multiple spatial size (partial last block + lane mask)
    # and generic float labels (argmax path); also check reduction='sum'.
    N2, C2, H2, W2 = 1, 3, 10, 9
    logits2 = jax.random.normal(k3, (N2, C2, H2, W2), dtype=jnp.float32)
    label2 = jax.random.normal(k4, (N2, C2, H2, W2), dtype=jnp.float32)
    loss2 = jax.block_until_ready(cross_entropy_with_logits(logits2, label2))
    ref2 = _reference_loss(logits2, label2)
    assert jnp.allclose(loss2, ref2, rtol=1e-5, atol=1e-6), (loss2, ref2)

    loss2s = jax.block_until_ready(
        cross_entropy_with_logits(logits2, label2, reduction="sum"))
    ref2s = _reference_loss(logits2, label2, reduction="sum")
    assert jnp.allclose(loss2s, ref2s, rtol=1e-5, atol=1e-5), (loss2s, ref2s)

    # Case 3: bf16 inputs + batch folding (bn > 1) + ragged hw mask.
    N3, C3, H3, W3 = 4, 2, 20, 20
    logits3 = jax.random.normal(k5, (N3, C3, H3, W3), dtype=jnp.bfloat16)
    cls3 = jax.random.randint(k6, (N3, H3, W3), 0, C3)
    label3 = jnp.transpose(
        jax.nn.one_hot(cls3, C3, dtype=jnp.bfloat16), (0, 3, 1, 2))
    loss3 = jax.block_until_ready(cross_entropy_with_logits(logits3, label3))
    ref3 = _reference_loss(logits3, label3)
    assert jnp.allclose(jnp.float32(loss3), jnp.float32(ref3),
                        rtol=1e-2, atol=1e-2), (loss3, ref3)

    print("KERNEL_OK")
</pallas_src>

<mosaic_0001>
module attributes {stable_mosaic.version = 11 : i64} {
  func.func @kernel(%arg0: i32, %arg1: i32, %arg2: memref<1x4x256xf32, #tpu.memory_space<vmem>>, %arg3: memref<1x4x256xf32, #tpu.memory_space<vmem>>, %arg4: memref<1x1x256xf32, #tpu.memory_space<vmem>>) attributes {dimension_semantics = [#tpu.dimension_semantics<parallel>, #tpu.dimension_semantics<arbitrary>], iteration_bounds = array<i64: 2, 1>, scalar_prefetch = 0 : i64, scratch_operands = 0 : i64, tpu.core_type = #tpu.core_type<tc>, window_params = [{transform_indices = @transform_0, window_bounds = array<i64: 1, 4, 256>}, {transform_indices = @transform_1, window_bounds = array<i64: 1, 4, 256>}, {transform_indices = @transform_2, window_bounds = array<i64: 1, 1, 256>}]} {
    %c0_i32 = arith.constant 0 : i32
    %0 = arith.cmpi eq, %arg1, %c0_i32 : i32
    %1 = arith.extui %0 : i1 to i32
    %c0_i32_0 = arith.constant 0 : i32
    %2 = arith.cmpi ne, %1, %c0_i32_0 : i32
    scf.if %2 {
      %cst_18 = arith.constant 0.000000e+00 : f32
      %35 = vector.broadcast %cst_18 : f32 to vector<1x1x256xf32>
      %c0_19 = arith.constant 0 : index
      %c0_20 = arith.constant 0 : index
      %c0_21 = arith.constant 0 : index
      %36 = vector.load %arg4[%c0_19, %c0_20, %c0_21] : memref<1x1x256xf32, #tpu.memory_space<vmem>>, vector<1x1x256xf32>
      tpu.vector_store %arg4[%c0_19, %c0_20, %c0_21], %35 {strides = array<i32>} : memref<1x1x256xf32, #tpu.memory_space<vmem>>, vector<1x1x256xf32>,
    } else {
    }
    %c0 = arith.constant 0 : index
    %c0_1 = arith.constant 0 : index
    %c0_2 = arith.constant 0 : index
    %3 = vector.load %arg2[%c0, %c0_1, %c0_2] : memref<1x4x256xf32, #tpu.memory_space<vmem>>, vector<1x4x256xf32>
    %c0_3 = arith.constant 0 : index
    %c0_4 = arith.constant 0 : index
    %c0_5 = arith.constant 0 : index
    %4 = vector.load %arg3[%c0_3, %c0_4, %c0_5] : memref<1x4x256xf32, #tpu.memory_space<vmem>>, vector<1x4x256xf32>
    %cst = arith.constant dense<0xFF800000> : vector<1x256xf32>
    %5 = vector.multi_reduction <maximumf>, %3, %cst [1] : vector<1x4x256xf32> to vector<1x256xf32>
    %6 = vector.shape_cast %5 : vector<1x256xf32> to vector<1x1x256xf32>
    %7 = vector.broadcast %6 : vector<1x1x256xf32> to vector<1x4x256xf32>
    %8 = arith.subf %3, %7 : vector<1x4x256xf32>
    %9 = math.exp %8 : vector<1x4x256xf32>
    %cst_6 = arith.constant dense<0.000000e+00> : vector<1x256xf32>
    %10 = vector.multi_reduction <add>, %9, %cst_6 [1] : vector<1x4x256xf32> to vector<1x256xf32>
    %11 = vector.shape_cast %10 : vector<1x256xf32> to vector<1x1x256xf32>
    %12 = math.log %11 : vector<1x1x256xf32>
    %13 = arith.addf %6, %12 : vector<1x1x256xf32>
    %14 = tpu.iota {dimensions = array<i32: 1>} : vector<1x4x256xi32>
    %cst_7 = arith.constant dense<0xFF800000> : vector<1x256xf32>
    %15 = vector.multi_reduction <maximumf>, %4, %cst_7 [1] : vector<1x4x256xf32> to vector<1x256xf32>
    %16 = vector.shape_cast %15 : vector<1x256xf32> to vector<1x1x256xf32>
    %17 = vector.broadcast %16 : vector<1x1x256xf32> to vector<1x4x256xf32>
    %18 = arith.cmpf oeq, %4, %17 : vector<1x4x256xf32>
    %c4_i32 = arith.constant 4 : i32
    %19 = vector.broadcast %c4_i32 : i32 to vector<1x4x256xi32>
    %20 = arith.select %18, %14, %19 : vector<1x4x256xi1>, vector<1x4x256xi32>
    %cst_8 = arith.constant dense<2147483647> : vector<1x256xi32>
    %21 = vector.multi_reduction <minsi>, %20, %cst_8 [1] : vector<1x4x256xi32> to vector<1x256xi32>
    %22 = vector.shape_cast %21 : vector<1x256xi32> to vector<1x1x256xi32>
    %23 = vector.broadcast %22 : vector<1x1x256xi32> to vector<1x4x256xi32>
    %24 = arith.cmpi eq, %14, %23 : vector<1x4x256xi32>
    %cst_9 = arith.constant 0.000000e+00 : f32
    %25 = vector.broadcast %cst_9 : f32 to vector<1x4x256xf32>
    %26 = arith.select %24, %3, %25 : vector<1x4x256xi1>, vector<1x4x256xf32>
    %cst_10 = arith.constant dense<0.000000e+00> : vector<1x256xf32>
    %27 = vector.multi_reduction <add>, %26, %cst_10 [1] : vector<1x4x256xf32> to vector<1x256xf32>
    %28 = vector.shape_cast %27 : vector<1x256xf32> to vector<1x1x256xf32>
    %29 = arith.subf %13, %28 : vector<1x1x256xf32>
    %c0_11 = arith.constant 0 : index
    %c0_12 = arith.constant 0 : index
    %c0_13 = arith.constant 0 : index
    %30 = vector.load %arg4[%c0_11, %c0_12, %c0_13] : memref<1x1x256xf32, #tpu.memory_space<vmem>>, vector<1x1x256xf32>
    %cst_14 = arith.constant dense<0.000000e+00> : vector<1x256xf32>
    %31 = vector.multi_reduction <add>, %29, %cst_14 [0] : vector<1x1x256xf32> to vector<1x256xf32>
    %32 = vector.shape_cast %31 : vector<1x256xf32> to vector<1x1x256xf32>
    %33 = arith.addf %30, %32 : vector<1x1x256xf32>
    %c0_15 = arith.constant 0 : index
    %c0_16 = arith.constant 0 : index
    %c0_17 = arith.constant 0 : index
    %34 = vector.load %arg4[%c0_15, %c0_16, %c0_17] : memref<1x1x256xf32, #tpu.memory_space<vmem>>, vector<1x1x256xf32>
    tpu.vector_store %arg4[%c0_15, %c0_16, %c0_17], %33 {strides = array<i32>} : memref<1x1x256xf32, #tpu.memory_space<vmem>>, vector<1x1x256xf32>,
    return
  }
  func.func @transform_0(%arg0: i32, %arg1: i32) -> (i32, i32, i32) {
    %c0_i32 = arith.constant 0 : i32
    %c0_i32_0 = arith.constant 0 : i32
    return %arg0, %c0_i32, %arg1 : i32, i32, i32
  }
  func.func @transform_1(%arg0: i32, %arg1: i32) -> (i32, i32, i32) {
    %c0_i32 = arith.constant 0 : i32
    %c0_i32_0 = arith.constant 0 : i32
    return %arg0, %c0_i32, %arg1 : i32, i32, i32
  }
  func.func @transform_2(%arg0: i32, %arg1: i32) -> (i32, i32, i32) {
    %c0_i32 = arith.constant 0 : i32
    %c0_i32_0 = arith.constant 0 : i32
    %c0_i32_1 = arith.constant 0 : i32
    return %arg0, %c0_i32, %c0_i32_0 : i32, i32, i32
  }
}

</mosaic_0001>

<bundles_post_ra>
// kernel: cross_entropy_with_logits.1
= control target key start
LH: loop header
LB: loop body
LE: loop exit
PB: predicated region body
PF: predicated region fallthrough
CT: control target
= control target key end

     0   :  { %s541_s9 = smov 0   ;;  %s543_s10 = smov 0   ;;  %s626_s0 = inlined_call_operand.vmem [shape: f32[2,4,256], index: 0, kind: input, shape index: {}]   ;;  %s627_s1 = inlined_call_operand.vmem [shape: f32[2,4,256], index: 1, kind: input, shape index: {}]   ;;  %s628_s2 = inlined_call_operand.vmem [shape: f32[2,1,256], index: 2, kind: output, shape index: {}]  }
   0x1   :  { %s545_s11 = smov 0  }
   0x2 LB: > { %s24_s12 = sadd.s32 1, %s517_s10  ;;  %p454_p0 = scmp.ge.s32.totalorder %s521_s11, 1  ;;  %s521_s11 = sphi %s545_s11, %s12_s11   ;;  %s517_s10 = sphi %s543_s10, %s632_s10   ;;  %s513_s9 = sphi %s541_s9, %s631_s9  }
   0x3   : > { %p26_p1 = scmp.ge.s32.totalorder %s24_s12, 2  ;;  %p148_p2 = scmp.lt.s32.totalorder %s521_s11, 3 }
   0x5   : > { %s634_s12 = smov (%p26_p1, %s24_s12), 0  ;;  %p149_p3 = pnand %p454_p0, %p148_p2 }
   0x6   : > { %p183_p4 = scmp.lt.s32.totalorder (!%p149_p3), %s513_s9, 1  ;;  %v210_v0 = vlaneseq (!%p149_p3)  ;;  %vm220_vm1 = vcmask (!%p149_p3), 1043456   ;;  %v523_v4 = vmov (!%p149_p3), 0.0   ;;  %v524_v13 = vmov (!%p149_p3), 839922192  }
   0x7   : > { %152 = sbr.rel (%p149_p3) target bundleno = 91 (0x5b), region = 28  ;;  %v290_v14 = vunpack.c.l.s4 (!%p149_p3), %v524_v13 }
   0x8   : > { %vm559_vm0 = vcmp.lt.s32.totalorder (!%p149_p3), %v210_v0, 256  ;;  %v589_v23 = vshrl.u32 (!%p149_p3), %v210_v0, 7 }
   0x9   : > { %v291_v24 = vunpack.c.0.s8 (!%p149_p3), %v290_v14 }
   0xb   : > { %v294_v33 = vsub.s32 (!%p149_p3), %v291_v24, %v589_v23 }
   0xd   : > { %v295_v40 = vrot.slane (!%p149_p3), %v589_v23, %v294_v33 }
   0xe   : > { %s636_s9 = smov (!%p183_p4, %s513_s9), 1 }
   0xf   : > { %s462_s13 = sshll.u32 %s636_s9, 3  ;;  %s459_s14 = sshll.u32 %s636_s9, 1 }
  0x10   : > { %s190_s17 = scalar_lea.vmem %s626_s0, %s462_s13  ;;  %s200_s20 = scalar_lea.vmem %s627_s1, %s462_s13 }
  0x11   : > { %s572_s23 = scalar_lea.vmem %s628_s2, %s459_s14  ;;  %v574_v2 = vld [vmem:[%s190_s17] sm:$0xff] }
  0x12   : > { %v216_v3 = vld [vmem:[%s200_s20] sm:$0xff]  ;;  %214 = vst.msk [vmem:[%s572_s23] sm:$0x3] %vm559_vm0, %v523_v4  ;;  %v581_v5 = vcombine.high %v574_v2, %v574_v2  ;;  %v221_v6 = vsel %vm220_vm1, %v574_v2, -inf }
  0x13   : > { %v268_v7 = vcombine.high %v216_v3, %v216_v3  ;;  %v270_v8 = vsel %vm220_vm1, %v216_v3, -inf  ;;  %v222_v9 = vrot.slane %v221_v6, 4 }
  0x14   : > { %v271_v10 = vrot.slane %v270_v8, 4  ;;  %v228_v11 = vsel %vm220_vm1, %v581_v5, -inf }
  0x15   : > { %v277_v12 = vsel %vm220_vm1, %v268_v7, -inf  ;;  %v223_v15 = vmax.f32 %v221_v6, %v222_v9  ;;  %v229_v16 = vrot.slane %v228_v11, 4 }
  0x16   : > { %v272_v17 = vmax.f32 %v270_v8, %v271_v10  ;;  %v278_v18 = vrot.slane %v277_v12, 4 }
  0x17   : > { %v224_v19 = vrot.slane %v223_v15, 2  ;;  %v230_v20 = vmax.f32 %v228_v11, %v229_v16 }
  0x18   : > { %v273_v21 = vrot.slane %v272_v17, 2  ;;  %v279_v22 = vmax.f32 %v277_v12, %v278_v18 }
  0x19   : > { %v225_v25 = vmax.f32 %v223_v15, %v224_v19  ;;  %v231_v26 = vrot.slane %v230_v20, 2 }
  0x1a   : > { %v274_v27 = vmax.f32 %v272_v17, %v273_v21  ;;  %v280_v28 = vrot.slane %v279_v22, 2 }
  0x1b   : > { %v226_v29 = vrot.slane %v225_v25, 1  ;;  %v232_v30 = vmax.f32 %v230_v20, %v231_v26 }
  0x1c   : > { %v275_v31 = vrot.slane %v274_v27, 1  ;;  %v281_v32 = vmax.f32 %v279_v22, %v280_v28 }
  0x1d   : > { %v592_v34 = vmax.f32 %v225_v25, %v226_v29  ;;  %v233_v35 = vrot.slane %v232_v30, 1  ;;  %v525_v29 = vmov 1966171168  }
  0x1e   : > { %v276_v36 = vmax.f32 %v274_v27, %v275_v31  ;;  %v282_v37 = vrot.slane %v281_v32, 1 }
  0x1f   : > { %v594_v38 = vmax.f32 %v232_v30, %v233_v35  ;;  %v345_v30 = vunpack.c.l.s4 %v525_v29 }
  0x20   : > { %v283_v39 = vmax.f32 %v281_v32, %v282_v37 }
  0x21   : > { %v237_v41 = vcombine.low %v592_v34, %v594_v38 }
  0x22   : > { %v286_v42 = vcombine.low %v276_v36, %v283_v39 }
  0x23   : > { %v239_v43 = vsub.f32 %v574_v2, %v237_v41 }
  0x24   : > { %vm288_vm2 = vcmp.eq.f32.partialorder %v216_v3, %v286_v42 }
  0x25   : > { %v296_v44 = vsel %vm288_vm2, %v295_v40, 4  ;;  %v240_v45 = vmul.f32 1.442695, %v239_v43  ;;  %v346_v40 = vunpack.c.0.s8 %v345_v30 }
  0x26   : > { %v297_v46 = vcombine.high %v296_v44, %v296_v44  ;;  %v298_v47 = vsel %vm220_vm1, %v296_v44, 2147483647 }
  0x27   : > { %v299_v48 = vrot.slane %v298_v47, 4  ;;  %493 = vpow2.f32 %v240_v45  ;;  %v349_v44 = vsub.s32 %v346_v40, %v589_v23 }
  0x28   : > { %v308_v49 = vsel %vm220_vm1, %v297_v46, 2147483647 }
  0x29   : > { %vm300_vm3 = vcmp.lt.s32.totalorder %v298_v47, %v299_v48  ;;  %v309_v50 = vrot.slane %v308_v49, 4 }
  0x2a   : > { %v301_v51 = vsel %vm300_vm3, %v298_v47, %v299_v48  ;;  %v338_v47 = vld [vmem:[%s572_s23] sm:$0x3] }
  0x2b   : > { %v302_v52 = vrot.slane %v301_v51, 2  ;;  %vm310_vm4 = vcmp.lt.s32.totalorder %v308_v49, %v309_v50 }
  0x2c   : > { %v311_v53 = vsel %vm310_vm4, %v308_v49, %v309_v50 }
  0x2d   : > { %vm303_vm5 = vcmp.lt.s32.totalorder %v301_v51, %v302_v52  ;;  %v312_v54 = vrot.slane %v311_v53, 2 }
  0x2e   : > { %v304_v55 = vsel %vm303_vm5, %v301_v51, %v302_v52 }
  0x2f   : > { %v305_v56 = vrot.slane %v304_v55, 1  ;;  %vm313_vm6 = vcmp.lt.s32.totalorder %v311_v53, %v312_v54 }
  0x30   : > { %v314_v57 = vsel %vm313_vm6, %v311_v53, %v312_v54 }
  0x31   : > { %vm306_vm7 = vcmp.lt.s32.totalorder %v304_v55, %v305_v56  ;;  %v315_v58 = vrot.slane %v314_v57, 1  ;;  %v494_v59 = vpop.eup %493 }
  0x32   : > { %v307_v60 = vsel %vm306_vm7, %v304_v55, %v305_v56  ;;  %v243_v61 = vcombine.high %v494_v59, %v494_v59  ;;  %v245_v62 = vsel %vm220_vm1, %v494_v59, 0.0 }
  0x33   : > { %vm316_vm8 = vcmp.lt.s32.totalorder %v314_v57, %v315_v58  ;;  %vm318_vm9 = vcmp.eq.s32.totalorder %v589_v23, %v307_v60  ;;  %v246_v63 = vrot.slane %v245_v62, 4 }
  0x34   : > { %v317_v0 = vsel %vm316_vm8, %v314_v57, %v315_v58  ;;  %v320_v3 = vsel %vm318_vm9, %v574_v2, 0.0  ;;  %v252_v4 = vsel %vm220_vm1, %v243_v61, 0.0 }
  0x35   : > { %vm319_vm10 = vcmp.eq.s32.totalorder %v589_v23, %v317_v0  ;;  %v322_v6 = vsel %vm220_vm1, %v320_v3, 0.0  ;;  %v247_v7 = vadd.f32 %v246_v63, %v245_v62  ;;  %v253_v8 = vrot.slane %v252_v4, 4 }
  0x36   : > { %v321_v9 = vsel %vm319_vm10, %v581_v5, 0.0  ;;  %v323_v10 = vrot.slane %v322_v6, 4 }
  0x37   : > { %v329_v11 = vsel %vm220_vm1, %v321_v9, 0.0  ;;  %v248_v12 = vrot.slane %v247_v7, 2  ;;  %v254_v13 = vadd.f32 %v253_v8, %v252_v4 }
  0x38   : > { %v330_v14 = vrot.slane %v329_v11, 4  ;;  %v324_v17 = vadd.f32 %v323_v10, %v322_v6 }
  0x39   : > { %v249_v15 = vadd.f32 %v248_v12, %v247_v7  ;;  %v255_v16 = vrot.slane %v254_v13, 2 }
  0x3a   : > { %v331_v19 = vadd.f32 %v330_v14, %v329_v11  ;;  %v325_v22 = vrot.slane %v324_v17, 2 }
  0x3b   : > { %v250_v2 = vrot.slane %v249_v15, 1  ;;  %v256_v18 = vadd.f32 %v255_v16, %v254_v13 }
  0x3c   : > { %v332_v25 = vrot.slane %v331_v19, 2  ;;  %v326_v5 = vadd.f32 %v325_v22, %v324_v17 }
  0x3d   : > { %v251_v20 = vadd.f32 %v250_v2, %v249_v15  ;;  %v257_v21 = vrot.slane %v256_v18, 1 }
  0x3e   : > { %v333_v26 = vadd.f32 %v332_v25, %v331_v19  ;;  %v327_v27 = vrot.slane %v326_v5, 1 }
  0x3f   : > { %v258_v24 = vadd.f32 %v257_v21, %v256_v18  ;;  %495 = vlog2.f32 %v251_v20 }
  0x40   : > { %v334_v28 = vrot.slane %v333_v26, 1  ;;  %v328_v33 = vadd.f32 %v327_v27, %v326_v5 }
  0x41   : > { %497 = vlog2.f32 %v258_v24 }
  0x42   : > { %v335_v39 = vadd.f32 %v334_v28, %v333_v26 }
  0x49   : > { %v496_v31 = vpop.eup %495 }
  0x4a   : > { %v260_v32 = vmul.f32 0.6931472, %v496_v31 }
  0x4b   : > { %v498_v35 = vpop.eup %497 }
  0x4c   : > { %v262_v36 = vmul.f32 0.6931472, %v498_v35  ;;  %v263_v37 = vadd.f32 %v260_v32, %v592_v34 }
  0x4e   : > { %v264_v41 = vadd.f32 %v262_v36, %v594_v38  ;;  %v336_v42 = vsub.f32 %v263_v37, %v328_v33 }
  0x50   : > { %v337_v43 = vsub.f32 %v264_v41, %v335_v39 }
  0x52   : > { %v343_v45 = vcombine.low %v336_v42, %v337_v43 }
  0x54   : > { %v350_v46 = vrot.slane %v343_v45, %v349_v44 }
  0x56   : > { %v357_v48 = vrot.slane %v350_v46, %v349_v44 }
  0x58   : > { %v359_v49 = vadd.f32 %v357_v48, %v338_v47 }
  0x5a   : > { %364 = vst.msk [vmem:[%s572_s23] sm:$0x3] %vm559_vm0, %v359_v49 }
  0x5b PF: > { %s12_s11 = sadd.s32 1, %s521_s11   ;;  %s631_s9 = smov %s517_s10 }
  0x5c   : > { %p9_p5 = scmp.ge.s32.totalorder %s12_s11, 4   ;;  %s632_s10 = smov %s634_s12 }
  0x5e   :  { %11 = sbr.rel (!%p9_p5) target bundleno = 2 (0x2), region = 65 }

</bundles_post_ra>
